<compile_context>
chip_gen: v5e
topology: v5e:2x2
jax: 0.10.0
libtpu: 0.0.40
codegen_flags: <defaults>
</compile_context>

<pallas_src>
import functools

import jax
import jax.numpy as jnp
from jax.experimental import pallas as pl
from jax.experimental.pallas import tpu as pltpu


def _tv_kernel(x_ref, h_ref, w_ref, *, H: int, W: int):
    """x_ref: (1, PB, H*W) block of flattened image planes (lane-dense).
    h_ref/w_ref: (1, 8, 128) per-block partial-sum tiles (value broadcast)."""
    HW = H * W
    # Upcast once to f32; f32 math is correct/fast on all generations
    # (v5e has no bf16 VPU support, so we do not compute diffs in bf16).
    xf = x_ref[0].astype(jnp.float32)                  # (PB, HW)

    # --- Vertical (H-direction) differences -------------------------------
    # Flat index k corresponds to pixel (k // W, k % W); k + W is the pixel
    # one row below.  All k in [0, (H-1)*W) are valid pairs, and
    # (H-1)*W == HW - W, so the forward difference is one exact contiguous
    # slice difference with no mask.
    if H > 1:
        dh = xf[:, W:] - xf[:, : HW - W]               # (PB, (H-1)*W)
        h_sum = jnp.sum(dh * dh)
    else:
        h_sum = jnp.float32(0.0)

    # --- Horizontal (W-direction) differences ------------------------------
    # k + 1 is the next column except when k is the last column of its row
    # (k % W == W - 1); zero those lanes out with an iota-derived mask.
    if W > 1:
        d1 = xf[:, 1:] - xf[:, : HW - 1]               # (PB, HW-1)
        lane = jax.lax.broadcasted_iota(jnp.int32, (1, HW - 1), 1)
        if (W & (W - 1)) == 0:                         # power-of-two fast path
            col_is_last = (lane & (W - 1)) == (W - 1)
        else:
            col_is_last = (lane % W) == (W - 1)
        dw = jnp.where(col_is_last, 0.0, d1)
        w_sum = jnp.sum(dw * dw)
    else:
        w_sum = jnp.float32(0.0)

    # Write the scalar partials broadcast across a full native (8, 128) tile
    # -> unmasked vector stores; the wrapper reads element [:, 0, 0].
    h_ref[...] = jnp.full(h_ref.shape, h_sum, dtype=jnp.float32)
    w_ref[...] = jnp.full(w_ref.shape, w_sum, dtype=jnp.float32)


def _padded_block_bytes(pb: int, hw: int, itemsize: int) -> int:
    """VMEM footprint of a (pb, hw) block after (8, 128) tile padding."""
    sub = -(-pb // 8) * 8
    lanes = -(-hw // 128) * 128
    return sub * lanes * itemsize


# Conservative on every generation (v7x has only 64 MiB physical VMEM).
_TOTAL_VMEM_BUDGET = 24 * 1024 * 1024
_VMEM_LIMIT_BYTES = 48 * 1024 * 1024


def _choose_plane_block(G: int, HW: int, in_itemsize: int) -> int:
    """Largest divisor PB of G such that the *padded* double-buffered input
    block plus ~4x f32 intermediates fit the VMEM budget, while keeping
    NB = G // PB >= 2 whenever G >= 2 (megacore sharding on v7x)."""
    best = 1
    for pb in range(1, G + 1):
        if G % pb:
            continue
        if G >= 2 and G // pb < 2:
            continue  # keep at least 2 grid steps for the 2 TCs on v7x
        est = (2 * _padded_block_bytes(pb, HW, in_itemsize)   # double-buffered input
               + 4 * _padded_block_bytes(pb, HW, 4))          # f32 cast/diff/sq temps
        if est <= _TOTAL_VMEM_BUDGET:
            best = pb
    return best


def tv_loss_pallas(img: jnp.ndarray) -> jnp.ndarray:
    """Total variation loss, identical semantics to the PyTorch module.

    loss = 2 * (h_tv / count_h + w_tv / count_w) / batch_size
    with count_h = C*(H-1)*W, count_w = C*H*(W-1).
    (H == 1 or W == 1 divides by zero, exactly like the PyTorch reference.)
    """
    B, C, H, W = img.shape
    G = B * C
    HW = H * W

    PB = _choose_plane_block(G, HW, jnp.dtype(img.dtype).itemsize)
    NB = G // PB
    x = img.reshape(NB, PB, HW)          # row-major: lane-dense flat planes

    kernel = functools.partial(_tv_kernel, H=H, W=W)

    h_part, w_part = pl.pallas_call(
        kernel,
        out_shape=(
            jax.ShapeDtypeStruct((NB, 8, 128), jnp.float32),
            jax.ShapeDtypeStruct((NB, 8, 128), jnp.float32),
        ),
        grid_spec=pltpu.PrefetchScalarGridSpec(
            num_scalar_prefetch=0,
            grid=(NB,),
            in_specs=[
                pl.BlockSpec((1, PB, HW), lambda g: (g, 0, 0)),
            ],
            out_specs=[
                pl.BlockSpec((1, 8, 128), lambda g: (g, 0, 0)),
                pl.BlockSpec((1, 8, 128), lambda g: (g, 0, 0)),
            ],
        ),
        compiler_params=pltpu.CompilerParams(
            dimension_semantics=("parallel",),
            vmem_limit_bytes=_VMEM_LIMIT_BYTES,
        ),
    )(x)

    h_tv = jnp.sum(h_part[:, 0, 0])
    w_tv = jnp.sum(w_part[:, 0, 0])
    count_h = float(C * (H - 1) * W)
    count_w = float(C * H * (W - 1))
    loss = 2.0 * (h_tv / count_h + w_tv / count_w) / float(B)
    return loss


def tv_loss_reference(img: jnp.ndarray) -> jnp.ndarray:
    """Pure-JAX reference mirroring the PyTorch tv_loss.forward."""
    B, C, H, W = img.shape
    count_h = C * (H - 1) * W
    count_w = C * H * (W - 1)
    h_tv = jnp.sum((img[:, :, 1:, :] - img[:, :, :-1, :]) ** 2)
    w_tv = jnp.sum((img[:, :, :, 1:] - img[:, :, :, :-1]) ** 2)
    return 2.0 * (h_tv / count_h + w_tv / count_w) / B


if __name__ == "__main__":
    key = jax.random.PRNGKey(0)
    B, C, H, W = 2, 4, 16, 16
    img = jax.random.uniform(key, (B, C, H, W), dtype=jnp.float32)

    out = tv_loss_pallas(img)
    out = jax.block_until_ready(out)

    ref = jax.block_until_ready(tv_loss_reference(img))
    assert jnp.allclose(out, ref, atol=1e-6, rtol=1e-5), (out, ref)

    print("KERNEL_OK")
</pallas_src>

<mosaic_0001>
module attributes {stable_mosaic.version = 11 : i64} {
  func.func @_tv_kernel(%arg0: i32, %arg1: memref<1x4x256xf32, #tpu.memory_space<vmem>>, %arg2: memref<1x8x128xf32, #tpu.memory_space<vmem>>, %arg3: memref<1x8x128xf32, #tpu.memory_space<vmem>>) attributes {dimension_semantics = [#tpu.dimension_semantics<parallel>], iteration_bounds = array<i64: 2>, scalar_prefetch = 0 : i64, scratch_operands = 0 : i64, tpu.core_type = #tpu.core_type<tc>, window_params = [{transform_indices = @transform_0, window_bounds = array<i64: 1, 4, 256>}, {transform_indices = @transform_1, window_bounds = array<i64: 1, 8, 128>}, {transform_indices = @transform_2, window_bounds = array<i64: 1, 8, 128>}]} {
    %c0 = arith.constant 0 : index
    %c0_0 = arith.constant 0 : index
    %c0_1 = arith.constant 0 : index
    %0 = vector.load %arg1[%c0, %c0_0, %c0_1] : memref<1x4x256xf32, #tpu.memory_space<vmem>>, vector<1x4x256xf32>
    %1 = vector.shape_cast %0 : vector<1x4x256xf32> to vector<4x256xf32>
    %2 = vector.extract_strided_slice %1 {offsets = [0, 16], sizes = [4, 240], strides = [1, 1]} : vector<4x256xf32> to vector<4x240xf32>
    %3 = vector.extract_strided_slice %1 {offsets = [0, 0], sizes = [4, 240], strides = [1, 1]} : vector<4x256xf32> to vector<4x240xf32>
    %4 = arith.subf %2, %3 : vector<4x240xf32>
    %5 = arith.mulf %4, %4 : vector<4x240xf32>
    %6 = vector.shape_cast %5 : vector<4x240xf32> to vector<1x4x240xf32>
    %cst = arith.constant dense<0.000000e+00> : vector<1xf32>
    %7 = vector.multi_reduction <add>, %6, %cst [1, 2] : vector<1x4x240xf32> to vector<1xf32>
    %8 = vector.shape_cast %7 : vector<1xf32> to vector<1x1x1xf32>
    %9 = vector.extract %8[0, 0, 0] : f32 from vector<1x1x1xf32>
    %10 = vector.extract_strided_slice %1 {offsets = [0, 1], sizes = [4, 255], strides = [1, 1]} : vector<4x256xf32> to vector<4x255xf32>
    %11 = vector.extract_strided_slice %1 {offsets = [0, 0], sizes = [4, 255], strides = [1, 1]} : vector<4x256xf32> to vector<4x255xf32>
    %12 = arith.subf %10, %11 : vector<4x255xf32>
    %13 = tpu.iota {dimensions = array<i32: 1>} : vector<1x255xi32>
    %c15_i32 = arith.constant 15 : i32
    %14 = vector.broadcast %c15_i32 : i32 to vector<1x255xi32>
    %15 = arith.andi %13, %14 : vector<1x255xi32>
    %c15_i32_2 = arith.constant 15 : i32
    %16 = vector.broadcast %c15_i32_2 : i32 to vector<1x255xi32>
    %17 = arith.cmpi eq, %15, %16 : vector<1x255xi32>
    %cst_3 = arith.constant 0.000000e+00 : f32
    %18 = vector.shape_cast %17 : vector<1x255xi1> to vector<1x255xi1>
    %19 = vector.broadcast %18 : vector<1x255xi1> to vector<4x255xi1>
    %20 = vector.broadcast %cst_3 : f32 to vector<4x255xf32>
    %21 = arith.select %19, %20, %12 : vector<4x255xi1>, vector<4x255xf32>
    %22 = arith.mulf %21, %21 : vector<4x255xf32>
    %23 = vector.shape_cast %22 : vector<4x255xf32> to vector<1x4x255xf32>
    %cst_4 = arith.constant dense<0.000000e+00> : vector<1xf32>
    %24 = vector.multi_reduction <add>, %23, %cst_4 [1, 2] : vector<1x4x255xf32> to vector<1xf32>
    %25 = vector.shape_cast %24 : vector<1xf32> to vector<1x1x1xf32>
    %26 = vector.extract %25[0, 0, 0] : f32 from vector<1x1x1xf32>
    %27 = vector.broadcast %9 : f32 to vector<1x8x128xf32>
    %c0_5 = arith.constant 0 : index
    %c0_6 = arith.constant 0 : index
    %c0_7 = arith.constant 0 : index
    %28 = vector.load %arg2[%c0_5, %c0_6, %c0_7] : memref<1x8x128xf32, #tpu.memory_space<vmem>>, vector<1x8x128xf32>
    tpu.vector_store %arg2[%c0_5, %c0_6, %c0_7], %27 {strides = array<i32>} : memref<1x8x128xf32, #tpu.memory_space<vmem>>, vector<1x8x128xf32>,
    %29 = vector.broadcast %26 : f32 to vector<1x8x128xf32>
    %c0_8 = arith.constant 0 : index
    %c0_9 = arith.constant 0 : index
    %c0_10 = arith.constant 0 : index
    %30 = vector.load %arg3[%c0_8, %c0_9, %c0_10] : memref<1x8x128xf32, #tpu.memory_space<vmem>>, vector<1x8x128xf32>
    tpu.vector_store %arg3[%c0_8, %c0_9, %c0_10], %29 {strides = array<i32>} : memref<1x8x128xf32, #tpu.memory_space<vmem>>, vector<1x8x128xf32>,
    return
  }
  func.func @transform_0(%arg0: i32) -> (i32, i32, i32) {
    %c0_i32 = arith.constant 0 : i32
    %c0_i32_0 = arith.constant 0 : i32
    %c0_i32_1 = arith.constant 0 : i32
    return %arg0, %c0_i32, %c0_i32_0 : i32, i32, i32
  }
  func.func @transform_1(%arg0: i32) -> (i32, i32, i32) {
    %c0_i32 = arith.constant 0 : i32
    %c0_i32_0 = arith.constant 0 : i32
    %c0_i32_1 = arith.constant 0 : i32
    return %arg0, %c0_i32, %c0_i32_0 : i32, i32, i32
  }
  func.func @transform_2(%arg0: i32) -> (i32, i32, i32) {
    %c0_i32 = arith.constant 0 : i32
    %c0_i32_0 = arith.constant 0 : i32
    %c0_i32_1 = arith.constant 0 : i32
    return %arg0, %c0_i32, %c0_i32_0 : i32, i32, i32
  }
}

</mosaic_0001>

<bundles_post_ra>
// kernel: tpu_custom_call.1
= control target key start
LH: loop header
LB: loop body
LE: loop exit
PB: predicated region body
PF: predicated region fallthrough
CT: control target
= control target key end

     0   :  { %8 = vsyncpa [#allocation3], 0  ;;  %s771_s0 = inlined_call_operand.hbm [shape: f32[2,4,256], index: 0, kind: input, shape index: {}]   ;;  %s772_s1 = inlined_call_operand.hbm [shape: f32[2,8,128], index: 1, kind: output, shape index: {0}]   ;;  %s773_s2 = inlined_call_operand.hbm [shape: f32[2,8,128], index: 2, kind: output, shape index: {1}]  }
   0x1   :  { %10 = vsyncpa [#allocation3 + $0x1], 0 }
   0x2   :  { %11 = vsyncpa [#allocation4], 0 }
   0x3   :  { %13 = vsyncpa [#allocation4 + $0x1], 0 }
   0x4   :  { %14 = vsyncpa [#allocation7], 0 }
   0x5   :  { %16 = vsyncpa [#allocation7 + $0x1], 0  ;;  %s623_s9 = smov 0   ;;  %s625_s10 = smov 0  }
   0x6   :  { %s627_s11 = smov 0   ;;  %s629_s12 = smov 0  }
   0x7 LB: > { %s644_s13 = sadd.s32 4294967295, %s602_s12   ;;  %s398_s14 = sadd.s32 4294967294, %s602_s12   ;;  %s602_s12 = sphi %s629_s12, %s783_s12   ;;  %s598_s11 = sphi %s627_s11, %s782_s11   ;;  %s594_s10 = sphi %s625_s10, %s781_s10   ;;  %s590_s9 = sphi %s623_s9, %s780_s9  }
   0x8   : > { %s648_s15 = sadd.s32 1, %s602_s12   ;;  %s29_s16 = sadd.s32 1, %s598_s11 }
   0x9   : > { %s26_s17 = ssub.s32 %s602_s12, %s648_s15  ;;  %p36_p0 = scmp.ne.s32.totalorder %s598_s11, %s594_s10 }
   0xa   : > { %p27_p1 = scmp.eq.s32.totalorder %s26_s17, 0  ;;  %p37_p2 = scmp.eq.s32.totalorder %s602_s12, 0 }
   0xb   : > { %p42_p3 = scmp.ne.s32.totalorder %s594_s10, %s590_s9  ;;  %p43_p4 = scmp.eq.s32.totalorder %s644_s13, 0 }
   0xc   : > { %s660_s18 = scalar_select %p27_p1, %s598_s11, %s29_s16  }
   0xd   : > { %p662_p5 = por %p37_p2, %p36_p0  ;;  %p666_p6 = por %p43_p4, %p42_p3 }
   0xe   : > { %p66_p7 = scmp.eq.s32.totalorder %s644_s13, 1  ;;  %p72_p8 = scmp.eq.s32.totalorder %s398_s14, 1 }
   0xf   : > { %p436_p10 = scmp.lt.s32.totalorder %s602_s12, 2  ;;  %s118_s23 = sand.u32 1, %s598_s11  }
  0x10   : > { %p673_p11 = por %p66_p7, %p36_p0  ;;  %p677_p12 = por %p72_p8, %p42_p3 }
  0x11   : > { %s414_s24 = sshll.u32 %s602_s12, 3  ;;  %s401_s25 = sshll.u32 %s118_s23, 3 }
  0x12   : > { %s127_s28 = scalar_lea.hbm %s771_s0, %s414_s24  ;;  %s122_s30 = scalar_lea.vmem [#allocation2], %s401_s25 }
  0x13   : > { %s129_s29 = sshll.u32 %s127_s28, 4  ;;  %s131_s3 = sshll.u32 %s122_s30, 4  ;;  %s130_s29 = int_to_ptr.hbm [resolvable:$true] %s129_s29  ;;  %s132_s3 = int_to_ptr.vmem [resolvable:$true] %s131_s3 }
  0x14   : > { %p688_p13 = pnand %p436_p10, %p662_p5  ;;  %p404_p0 = scmp.ge.s32.totalorder %s602_s12, 1 }
  0x15   : > { %p136_p1 = scmp.lt.s32.totalorder %s602_s12, 3  ;;  %s119_s5 = scalar_lea.sflag [#allocation3], %s118_s23 }
  0x16   : > { %s474_s6 = sshra.s32 %s130_s29, 4  ;;  %p478_p3 = pneg %p688_p13  ;;  %s475_s6 = int_to_ptr.hbm [resolvable:$true] %s474_s6 }
  0x17   : > { %s476_s7 = scalar_lea.hbm %s475_s6, 8  ;;  %s481_s16 = scalar_lea.hbm %s771_s0, 16 }
  0x18   : > { %p477_p2 = scmp.ne.s32.totalorder %s475_s6, %s476_s7  ;;  %p482_p5 = scmp.lt.s32.totalorder %s475_s6, %s771_s0 }
  0x19   : > { %p483_p8 = scmp.lt.s32.totalorder %s481_s16, %s476_s7 }
  0x1a   : > { %p479_p4 = pnand %p478_p3, %p477_p2 }
  0x1b   : > { %p484_p10 = por %p483_p8, %p482_p5 }
  0x1c   : > { %p480_p7 = pneg %p479_p4 }
  0x1e   : > { %p485_p9 = pnand %p484_p10, %p480_p7 }
  0x20   : > { %488 = shalt.err (!%p485_p9)
}
  0x21   : > { %428 = dma.hbm_to_vmem [thread:$0]  (!%p688_p13), %s130_s29, 128, %s132_s3, %s119_s5  }
  0x22   : > { %p137_p2 = pnand %p404_p0, %p136_p1 }
  0x23   : > { %s709_s23 = sand.u32 (!%p137_p2), 1, %s594_s10  }
  0x24   : > { %140 = sbr.rel (%p137_p2) target bundleno = 493 (0x1ed), region = 24  ;;  %s712_s24 = sshll.u32 (!%p137_p2), %s709_s23, 3 }
  0x25   : > { %s143_s25 = scalar_lea.sflag (!%p137_p2), [#allocation3], %s709_s23  ;;  %s146_s26 = scalar_lea.vmem (!%p137_p2), [#allocation2], %s712_s24 }
  0x29   : > { %577 = dma.done.wait (%p666_p6), %s143_s25, 128  }
  0x2a   : > { %579 = vsyncadd (%p666_p6), %s143_s25, 4294967168  ;;  %v173_v0 = vld [vmem:[%s146_s26] sm:$0xff]  ;;  %s604_s27 = smov 16   ;;  %s605_s28 = smov 1   ;;  %vm178_vm0 = vcmask 130048   ;;  %vm212_vm1 = vcmask 7168   ;;  %v216_v20 = vlaneseq }
  0x2b   : > { %175 = vrot.lane.b32.xlu0 %v173_v0, %s604_s27  ;;  %s606_s20 = smov 112   ;;  %s607_s29 = smov 127   ;;  %vm191_vm2 = vcmask 916480   ;;  %vm197_vm3 = vcmask 912384   ;;  %vm195_vm4 = vcmask 1043456   ;;  %vm235_vm6 = vcmask 1039360  }
  0x2c   : > { %v217_v21 = vand.u32 127, %v216_v20  ;;  %vm244_vm8 = vcmask 1035264   ;;  %s410_s30 = sshll.u32 %s644_s13, 3  ;;  %s165_s6 = scalar_lea.vmem [#allocation5], %s712_s24 }
  0x2d   : > { %s276_s5 = scalar_lea.hbm %s772_s1, %s410_s30  ;;  %s278_s7 = sshll.u32 %s165_s6, 4  ;;  %s279_s7 = int_to_ptr.vmem [resolvable:$true] %s278_s7 }
  0x2e   : > { %v218_v22 = vadd.s32 128, %v217_v21  ;;  %v219_v25 = vand.u32 15, %v217_v21  ;;  %s280_s8 = sshll.u32 %s276_s5, 4  ;;  %s261_s16 = scalar_lea.sflag [#allocation4], %s709_s23  ;;  %s281_s8 = int_to_ptr.hbm [resolvable:$true] %s280_s8 }
  0x2f   : > { %s518_s17 = sshra.s32 %s281_s8, 4  ;;  %s524_s26 = scalar_lea.hbm %s772_s1, 16  ;;  %s519_s17 = int_to_ptr.hbm [resolvable:$true] %s518_s17 }
  0x30   : > { %v220_v24 = vand.u32 15, %v218_v22  ;;  %vm221_vm7 = vcmp.eq.s32.totalorder %v219_v25, 15  ;;  %s520_s19 = scalar_lea.hbm %s519_s17, 8  ;;  %p525_p0 = scmp.lt.s32.totalorder %s519_s17, %s772_s1 }
  0x31   : > { %p521_p6 = scmp.ne.s32.totalorder %s519_s17, %s520_s19  ;;  %p526_p1 = scmp.lt.s32.totalorder %s524_s26, %s520_s19 }
  0x32   : > { %vm222_vm5 = vcmp.eq.s32.totalorder %v220_v24, 15 }
  0x33   : > { %209 = vrot.lane.b32.xlu0 %v173_v0, %s605_s28  ;;  %p522_p9 = pnand %p521_p6, %p673_p11  ;;  %p527_p3 = por %p526_p1, %p525_p0 }
  0x35   : > { %p523_p13 = pneg %p522_p9 }
  0x37   : > { %p528_p4 = pnand %p527_p3, %p523_p13 }
  0x9d   : > { %v176_v1 = vpop.permute.xlu0 %175 }
  0x9e   : > { %v177_v2 = vrot.slane %v176_v1, 4 }
  0xa0   : > { %v179_v3 = vsel %vm178_vm0, %v177_v2, %v176_v1 }
  0xa1   : > { %v181_v4 = vsub.f32 %v173_v0, %v179_v3 }
  0xa3   : > { %v182_v5 = vmul.f32 %v181_v4, %v181_v4 }
  0xa5   : > { %184 = vst [vmem:[#allocation1] ss:$2 sm:$0xff] %v182_v5  ;;  %v210_v6 = vpop.permute.xlu0 %209 }
  0xa6   : > { %v211_v7 = vrot.slane %v210_v6, 4 }
  0xa8   : > { %v213_v8 = vsel %vm212_vm1, %v211_v7, %v210_v6 }
  0xa9   : > { %v215_v9 = vsub.f32 %v173_v0, %v213_v8 }
  0xac   : > { %v185_v10 = vld.sshfl [vmem:[#allocation1] sm:$0xff pattern:$0x75316420]  ;;  %v186_v11 = vld.sshfl [vmem:[#allocation1 + $0x8] sm:$0xff pattern:$0x75316420] }
  0xad   : > { %187 = vrot.lane.b32.xlu2 %v185_v10, %s606_s20  ;;  %228 = vst [vmem:[#allocation1] ss:$2 sm:$0xff] %v215_v9 }
  0xb4   : > { %v229_v12 = vld.sshfl [vmem:[#allocation1] sm:$0xff pattern:$0x75316420]  ;;  %v230_v13 = vld.sshfl [vmem:[#allocation1 + $0x8] sm:$0xff pattern:$0x75316420] }
  0xb5   : > { %189 = vrot.lane.b32.xlu2 %v186_v11, %s606_s20  ;;  %231 = vrot.lane.b32.xlu1 %v229_v12, %s607_s29 }
  0xbd   : > { %233 = vrot.lane.b32.xlu1 %v230_v13, %s607_s29 }
 0x107   : > { %v188_v14 = vpop.permute.xlu2 %187 }
 0x10f   : > { %v190_v15 = vpop.permute.xlu2 %189 }
 0x110   : > { %v192_v16 = vsel %vm191_vm2, %v188_v14, %v190_v15  ;;  %v198_v17 = vsel %vm197_vm3, %v190_v15, 0.0 }
 0x111   : > { %v196_v18 = vsel %vm195_vm4, %v192_v16, 0.0 }
 0x112   : > { %v199_v19 = vadd.f32 %v198_v17, %v196_v18 }
 0x114   : > { %200 = vadd.xlane.f32.xlu0 %v199_v19 }
 0x127   : > { %v232_v23 = vpop.permute.xlu1 %231 }
 0x12f   : > { %v234_v26 = vpop.permute.xlu1 %233 }
 0x130   : > { %v236_v27 = vsel %vm235_vm6, %v232_v23, %v234_v26  ;;  %v240_v28 = vsel %vm222_vm5, 0.0, %v234_v26 }
 0x131   : > { %v239_v29 = vsel %vm221_vm7, 0.0, %v236_v27  ;;  %v242_v30 = vmul.f32 %v240_v28, %v240_v28 }
 0x132   : > { %v241_v31 = vmul.f32 %v239_v29, %v239_v29 }
 0x133   : > { %v245_v32 = vsel %vm244_vm8, %v242_v30, 0.0 }
 0x134   : > { %v243_v33 = vsel %vm195_vm4, %v241_v31, 0.0 }
 0x135   : > { %v246_v34 = vadd.f32 %v245_v32, %v243_v33 }
 0x137   : > { %247 = vadd.xlane.f32.xlu1 %v246_v34 }
 0x187   : > { %v201_v35 = vpop.xlane.xlu0 %200 }
 0x188   : > { %v202_v36 = vrot.slane %v201_v35, 4 }
 0x18a   : > { %v203_v37 = vadd.f32 %v202_v36, %v201_v35 }
 0x18c   : > { %v204_v38 = vrot.slane %v203_v37, 2 }
 0x18e   : > { %v205_v39 = vadd.f32 %v204_v38, %v203_v37 }
 0x190   : > { %v206_v40 = vrot.slane %v205_v39, 1 }
 0x192   : > { %v207_v41 = vadd.f32 %v206_v40, %v205_v39 }
 0x194   : > { %415 = vpush %v207_v41 }
 0x1aa   : > { %v248_v42 = vpop.xlane.xlu1 %247 }
 0x1ab   : > { %v249_v43 = vrot.slane %v248_v42, 4 }
 0x1ad   : > { %v250_v44 = vadd.f32 %v249_v43, %v248_v42 }
 0x1af   : > { %v251_v45 = vrot.slane %v250_v44, 2 }
 0x1b1   : > { %v252_v46 = vadd.f32 %v251_v45, %v250_v44 }
 0x1b3   : > { %v253_v47 = vrot.slane %v252_v46, 1 }
 0x1b5   : > { %v254_v48 = vadd.f32 %v253_v47, %v252_v46 }
 0x1b7   : > { %417 = vpush %v254_v48 }
 0x1c5   : > { %s416_s14 = spop %415 }
 0x1c6   : > { %v256_v49 = vstv %s416_s14 }
 0x1c7   : > { %257 = vst [vmem:[%s165_s6] sm:$0xff] %v256_v49 }
 0x1c8   : > { %531 = shalt.err (!%p528_p4)
}
 0x1c9   : > { %421 = dma.vmem_to_hbm [thread:$0]  (%p673_p11), %s279_s7, 128, %s281_s8, %s261_s16  }
 0x1ca   : > { %s290_s3 = scalar_lea.hbm %s773_s2, %s410_s30  ;;  %s172_s4 = scalar_lea.vmem [#allocation6], %s712_s24 }
 0x1cb   : > { %s292_s5 = sshll.u32 %s172_s4, 4  ;;  %s294_s6 = sshll.u32 %s290_s3, 4  ;;  %s293_s5 = int_to_ptr.vmem [resolvable:$true] %s292_s5  ;;  %s295_s6 = int_to_ptr.hbm [resolvable:$true] %s294_s6 }
 0x1cc   : > { %s266_s17 = scalar_lea.sflag [#allocation7], %s709_s23  ;;  %s546_s19 = sshra.s32 %s295_s6, 4  ;;  %s547_s19 = int_to_ptr.hbm [resolvable:$true] %s546_s19 }
 0x1cd   : > { %s548_s13 = scalar_lea.hbm %s547_s19, 8  ;;  %s552_s30 = scalar_lea.hbm %s773_s2, 16 }
 0x1ce   : > { %p549_p7 = scmp.ne.s32.totalorder %s547_s19, %s548_s13  ;;  %p553_p10 = scmp.lt.s32.totalorder %s547_s19, %s773_s2 }
 0x1cf   : > { %p554_p2 = scmp.lt.s32.totalorder %s552_s30, %s548_s13 }
 0x1d0   : > { %p550_p5 = pnand %p549_p7, %p673_p11 }
 0x1d1   : > { %p555_p6 = por %p554_p2, %p553_p10 }
 0x1d2   : > { %p551_p8 = pneg %p550_p5 }
 0x1d4   : > { %p556_p9 = pnand %p555_p6, %p551_p8 }
 0x1e8   : > { %s418_s14 = spop %417 }
 0x1e9   : > { %v258_v50 = vstv %s418_s14 }
 0x1ea   : > { %259 = vst [vmem:[%s172_s4] sm:$0xff] %v258_v50 }
 0x1eb   : > { %559 = shalt.err (!%p556_p9)
}
 0x1ec   : > { %422 = dma.vmem_to_hbm [thread:$0]  (%p673_p11), %s293_s5, 128, %s295_s6, %s266_s17  }
 0x1ed PF: > { %s306_s23 = sand.u32 1, %s590_s9   ;;  %p779_p13 = scmp.ge.s32.totalorder %s602_s12, 2 }
 0x1ee   : > { %s307_s25 = scalar_lea.sflag [#allocation4], %s306_s23 }
 0x1ef   : > { %p430_p0 = pnand %p779_p13, %p677_p12 }
 0x1f1   : > { %p431_p1 = pneg %p430_p0 }
 0x1f3   : > { %581 = dma.done.wait (%p431_p1), %s307_s25, 128  }
 0x1f4   : > { %583 = vsyncadd (%p431_p1), %s307_s25, 4294967168  ;;  %s317_s26 = scalar_lea.sflag [#allocation7], %s306_s23 }
 0x1f5   : > { %585 = dma.done.wait (%p431_p1), %s317_s26, 128  }
 0x1f6   : > { %587 = vsyncadd (%p431_p1), %s317_s26, 4294967168  ;;  %p19_p11 = scmp.ge.s32.totalorder %s648_s15, 4   ;;  %s780_s9 = smov %s594_s10 }
 0x1f7   : > { %s781_s10 = smov %s598_s11  ;;  %s782_s11 = smov %s660_s18 }
 0x1f8   : > { %s783_s12 = smov %s648_s15  ;;  %21 = sbr.rel (!%p19_p11) target bundleno = 7 (0x7), region = 86 }
 0x1fd   :  { %323 = vsyncpa [#allocation3], 1 }
 0x1fe   :  { %325 = vsyncpa [#allocation3 + $0x1], 1 }
 0x1ff   :  { %326 = vsyncpa [#allocation4], 1 }
 0x200   :  { %328 = vsyncpa [#allocation4 + $0x1], 1 }
 0x201   :  { %329 = vsyncpa [#allocation7], 1 }
 0x202   :  { %331 = vsyncpa [#allocation7 + $0x1], 1 }

</bundles_post_ra>
